<compile_context>
chip_gen: v6e
topology: v6e:2x2x1
jax: 0.10.0
libtpu: 0.0.40
codegen_flags: <defaults>
</compile_context>

<pallas_src>
import jax
import jax.numpy as jnp
from jax import lax
from jax.experimental import pallas as pl
from jax.experimental.pallas import tpu as pltpu

KH = KW = 3          # kernel_size = 3
PAD_H, PAD_W = 0, 1  # padding = (0, 1)  (PyTorch: (pad_h, pad_w))
NEG_SLOPE = 0.01     # LeakyReLU negative_slope


def _make_single_conv_kernel(H, W, Bblk):
    """Kernel closure over the static spatial / batch-block sizes."""
    HW = H * W

    def kernel(x_ref, w_ref, b_ref, o_ref):
        # x_ref: (Bblk, Cin, H*W)   NCHW input, spatial dims row-major flattened (free reshape)
        # w_ref: (KH*KW, Cout, Cin) weights, leading dim ordered (kh, kw), matmul dtype
        # b_ref: (Cout, 1) f32 bias
        # o_ref: (Bblk, Cout, H*W)  full-grid output; rows h=0 / h=H-1 are invalid (roll wrap)
        #        and are sliced off in the wrapper -> the store stays a full-lane, 128-multiple vst.

        # Width-edge masks built in-kernel (no mask input stream): the +-1 lane rolls wrap
        # across H-row boundaries exactly at the columns the conv zero-pads.
        col = lax.broadcasted_iota(jnp.int32, (1, HW), 1) % W
        mask_l = col >= 1          # valid lanes for the kw=0 (left-neighbour) taps
        mask_r = col <= W - 2      # valid lanes for the kw=2 (right-neighbour) taps
        bias = b_ref[...]          # (Cout, 1) f32, broadcast over lanes

        # Hoist the 9 tiny weight tiles out of the batch loop.
        wk = [w_ref[k] for k in range(KH * KW)]

        for b in range(Bblk):
            xf = x_ref[b]                                   # (Cin, H*W)
            acc = None
            for kh in range(KH):
                for kw in range(KW):
                    # tap[p] = x[p + (kh-1)*W + (kw-1)]; wrong values appear only on lanes
                    # that are either width-masked or in the discarded edge rows.
                    shift = ((1 - kh) * W + (1 - kw)) % HW
                    t = pltpu.roll(xf, shift, axis=1) if shift else xf
                    if kw == 0:
                        t = jnp.where(mask_l, t, 0.0).astype(xf.dtype)
                    elif kw == 2:
                        t = jnp.where(mask_r, t, 0.0).astype(xf.dtype)
                    # Register-resident (Cout, Cin) x (Cin, H*W) MXU matmul, f32 accumulation.
                    d = jnp.dot(wk[kh * KW + kw], t,
                                preferred_element_type=jnp.float32)
                    acc = d if acc is None else acc + d
            acc = acc + bias                                # bias (broadcast over lanes)
            acc = jnp.where(acc > 0, acc, NEG_SLOPE * acc)  # LeakyReLU(0.01)
            o_ref[b] = acc.astype(o_ref.dtype)              # lane-dense (Cout, H*W) store

    return kernel


def _pick_batch_block(B):
    """Generation-aware batch blocking: 1 grid step on single-TC chips (v5e/v6e),
    >=2 parallel steps on dual-TC v7x (when the batch divides evenly)."""
    try:
        kind = jax.devices()[0].device_kind.lower()
    except Exception:
        kind = ""
    n_tc = 2 if ("v7" in kind or "tpu7" in kind) else 1
    for steps in range(min(n_tc, B), 0, -1):
        if B % steps == 0:
            return B // steps
    return B


def single_conv(x_nchw, weight_oihw, bias, *, use_bf16=False, batch_block=None):
    """x_nchw: (B, Cin, H, W). weight: (Cout, Cin, KH, KW). bias: (Cout,). Returns NCHW."""
    B, Cin, H, W = x_nchw.shape
    Cout = weight_oihw.shape[0]
    Ho = H + 2 * PAD_H - (KH - 1)
    Wo = W + 2 * PAD_W - (KW - 1)
    assert Wo == W and Ho == H - 2 and H >= 3, "holds for padding=(0,1), kernel_size=3"
    HW = H * W
    cdt = jnp.bfloat16 if use_bf16 else x_nchw.dtype   # MXU input dtype

    Bblk = batch_block if batch_block is not None else _pick_batch_block(B)
    assert B % Bblk == 0
    n_steps = B // Bblk

    # Wrapper prep: only a free contiguous reshape of x (plus a cast for the bf16 path) and
    # tiny weight / bias tensors.  No transpose / pad HBM passes over the activations.
    x_flat = x_nchw.reshape(B, Cin, HW).astype(cdt)
    w3 = jnp.transpose(weight_oihw, (2, 3, 0, 1)).reshape(KH * KW, Cout, Cin).astype(cdt)
    b2 = bias.reshape(Cout, 1).astype(jnp.float32)

    kernel = _make_single_conv_kernel(H, W, Bblk)
    out_full = pl.pallas_call(
        kernel,
        out_shape=jax.ShapeDtypeStruct((B, Cout, HW), x_nchw.dtype),
        grid_spec=pltpu.PrefetchScalarGridSpec(
            num_scalar_prefetch=0,
            grid=(n_steps,),
            in_specs=[
                pl.BlockSpec((Bblk, Cin, HW), lambda i: (i, 0, 0)),
                pl.BlockSpec((KH * KW, Cout, Cin), lambda i: (0, 0, 0)),
                pl.BlockSpec((Cout, 1), lambda i: (0, 0)),
            ],
            out_specs=pl.BlockSpec((Bblk, Cout, HW), lambda i: (i, 0, 0)),
        ),
        compiler_params=pltpu.CompilerParams(
            dimension_semantics=("parallel",)),   # feeds both v7x TensorCores when n_steps >= 2
    )(x_flat, w3, b2)

    # Free contiguous reshape to NCHW; drop the two invalid edge rows (pad_h = 0).
    return out_full.reshape(B, Cout, H, W)[:, :, 1:H - 1, :]


def _reference(x_nchw, weight_oihw, bias):
    y = lax.conv_general_dilated(
        x_nchw, weight_oihw, window_strides=(1, 1),
        padding=((PAD_H, PAD_H), (PAD_W, PAD_W)),
        dimension_numbers=("NCHW", "OIHW", "NCHW"))
    y = y + bias.reshape(1, -1, 1, 1)
    return jnp.where(y > 0, y, NEG_SLOPE * y)


if __name__ == "__main__":
    key = jax.random.PRNGKey(0)
    B, Cin, Cout, H, W = 2, 4, 8, 16, 16

    kx, kw_, kb = jax.random.split(key, 3)
    x = jax.random.normal(kx, (B, Cin, H, W), jnp.float32)
    # PyTorch default init: U(-1/sqrt(fan_in), 1/sqrt(fan_in)).
    fan_in = Cin * KH * KW
    bound = 1.0 / (fan_in ** 0.5)
    weight = jax.random.uniform(kw_, (Cout, Cin, KH, KW), jnp.float32,
                                minval=-bound, maxval=bound)
    bias = jax.random.uniform(kb, (Cout,), jnp.float32, minval=-bound, maxval=bound)

    ref = jax.block_until_ready(_reference(x, weight, bias))

    # Exact (f32 MXU) path — matches the PyTorch module's f32 semantics.
    out = jax.block_until_ready(single_conv(x, weight, bias))
    assert out.shape == (B, Cout, H - 2, W), out.shape
    assert jnp.allclose(out, ref, atol=5e-4, rtol=5e-4), "f32 kernel mismatch vs reference"

    # bf16 MXU-input path (f32 accumulation) — the v6e/v7x-friendly variant.
    out_bf16 = jax.block_until_ready(single_conv(x, weight, bias, use_bf16=True))
    assert jnp.allclose(out_bf16, ref, atol=5e-2, rtol=5e-2), "bf16 kernel mismatch vs reference"

    # Forced 2-step grid (the v7x blocking) must be numerically identical on any chip.
    out_2 = jax.block_until_ready(single_conv(x, weight, bias, batch_block=1))
    assert jnp.allclose(out_2, ref, atol=5e-4, rtol=5e-4), "batch_block=1 kernel mismatch"

    print("KERNEL_OK")
</pallas_src>

<mosaic_0001>
module attributes {stable_mosaic.version = 11 : i64} {
  func.func @kernel(%arg0: i32, %arg1: memref<2x4x256xf32, #tpu.memory_space<vmem>>, %arg2: memref<9x8x4xf32, #tpu.memory_space<vmem>>, %arg3: memref<8x1xf32, #tpu.memory_space<vmem>>, %arg4: memref<2x8x256xf32, #tpu.memory_space<vmem>>) attributes {dimension_semantics = [#tpu.dimension_semantics<parallel>], iteration_bounds = array<i64: 1>, scalar_prefetch = 0 : i64, scratch_operands = 0 : i64, tpu.core_type = #tpu.core_type<tc>, window_params = [{transform_indices = @transform_0, window_bounds = array<i64: 2, 4, 256>}, {pipeline_mode = #tpu.pipeline_mode<synchronous>, transform_indices = @transform_1, window_bounds = array<i64: 9, 8, 4>}, {pipeline_mode = #tpu.pipeline_mode<synchronous>, transform_indices = @transform_2, window_bounds = array<i64: 8, 1>}, {transform_indices = @transform_3, window_bounds = array<i64: 2, 8, 256>}]} {
    %0 = tpu.iota {dimensions = array<i32: 1>} : vector<1x256xi32>
    %c16_i32 = arith.constant 16 : i32
    %c0_i32 = arith.constant 0 : i32
    %1 = arith.cmpi eq, %c16_i32, %c0_i32 : i32
    %c1_i32 = arith.constant 1 : i32
    %2 = arith.select %1, %c1_i32, %c16_i32 : i32
    %3 = vector.broadcast %2 : i32 to vector<1x256xi32>
    %4 = arith.remsi %0, %3 : vector<1x256xi32>
    %c0_i32_0 = arith.constant 0 : i32
    %5 = vector.broadcast %c0_i32_0 : i32 to vector<1x256xi32>
    %6 = arith.cmpi ne, %4, %5 : vector<1x256xi32>
    %c0_i32_1 = arith.constant 0 : i32
    %7 = vector.broadcast %c0_i32_1 : i32 to vector<1x256xi32>
    %8 = arith.cmpi slt, %4, %7 : vector<1x256xi32>
    %c0_i32_2 = arith.constant 0 : i32
    %9 = arith.cmpi slt, %2, %c0_i32_2 : i32
    %10 = vector.broadcast %9 : i1 to vector<1x256xi1>
    %11 = vector.broadcast %10 : vector<1x256xi1> to vector<1x256xi1>
    %12 = arith.xori %8, %11 : vector<1x256xi1>
    %13 = arith.andi %12, %6 : vector<1x256xi1>
    %14 = vector.broadcast %2 : i32 to vector<1x256xi32>
    %15 = arith.addi %4, %14 : vector<1x256xi32>
    %16 = arith.select %13, %15, %4 : vector<1x256xi1>, vector<1x256xi32>
    %c1_i32_3 = arith.constant 1 : i32
    %17 = vector.broadcast %c1_i32_3 : i32 to vector<1x256xi32>
    %18 = arith.cmpi sge, %16, %17 : vector<1x256xi32>
    %c14_i32 = arith.constant 14 : i32
    %19 = vector.broadcast %c14_i32 : i32 to vector<1x256xi32>
    %20 = arith.cmpi sle, %16, %19 : vector<1x256xi32>
    %c0 = arith.constant 0 : index
    %c0_4 = arith.constant 0 : index
    %21 = vector.load %arg3[%c0, %c0_4] : memref<8x1xf32, #tpu.memory_space<vmem>>, vector<8x1xf32>
    %c0_5 = arith.constant 0 : index
    %c0_6 = arith.constant 0 : index
    %c0_7 = arith.constant 0 : index
    %22 = vector.load %arg2[%c0_5, %c0_6, %c0_7] : memref<9x8x4xf32, #tpu.memory_space<vmem>>, vector<1x8x4xf32>
    %23 = vector.shape_cast %22 : vector<1x8x4xf32> to vector<8x4xf32>
    %c1 = arith.constant 1 : index
    %c0_8 = arith.constant 0 : index
    %c0_9 = arith.constant 0 : index
    %24 = vector.load %arg2[%c1, %c0_8, %c0_9] : memref<9x8x4xf32, #tpu.memory_space<vmem>>, vector<1x8x4xf32>
    %25 = vector.shape_cast %24 : vector<1x8x4xf32> to vector<8x4xf32>
    %c2 = arith.constant 2 : index
    %c0_10 = arith.constant 0 : index
    %c0_11 = arith.constant 0 : index
    %26 = vector.load %arg2[%c2, %c0_10, %c0_11] : memref<9x8x4xf32, #tpu.memory_space<vmem>>, vector<1x8x4xf32>
    %27 = vector.shape_cast %26 : vector<1x8x4xf32> to vector<8x4xf32>
    %c3 = arith.constant 3 : index
    %c0_12 = arith.constant 0 : index
    %c0_13 = arith.constant 0 : index
    %28 = vector.load %arg2[%c3, %c0_12, %c0_13] : memref<9x8x4xf32, #tpu.memory_space<vmem>>, vector<1x8x4xf32>
    %29 = vector.shape_cast %28 : vector<1x8x4xf32> to vector<8x4xf32>
    %c4 = arith.constant 4 : index
    %c0_14 = arith.constant 0 : index
    %c0_15 = arith.constant 0 : index
    %30 = vector.load %arg2[%c4, %c0_14, %c0_15] : memref<9x8x4xf32, #tpu.memory_space<vmem>>, vector<1x8x4xf32>
    %31 = vector.shape_cast %30 : vector<1x8x4xf32> to vector<8x4xf32>
    %c5 = arith.constant 5 : index
    %c0_16 = arith.constant 0 : index
    %c0_17 = arith.constant 0 : index
    %32 = vector.load %arg2[%c5, %c0_16, %c0_17] : memref<9x8x4xf32, #tpu.memory_space<vmem>>, vector<1x8x4xf32>
    %33 = vector.shape_cast %32 : vector<1x8x4xf32> to vector<8x4xf32>
    %c6 = arith.constant 6 : index
    %c0_18 = arith.constant 0 : index
    %c0_19 = arith.constant 0 : index
    %34 = vector.load %arg2[%c6, %c0_18, %c0_19] : memref<9x8x4xf32, #tpu.memory_space<vmem>>, vector<1x8x4xf32>
    %35 = vector.shape_cast %34 : vector<1x8x4xf32> to vector<8x4xf32>
    %c7 = arith.constant 7 : index
    %c0_20 = arith.constant 0 : index
    %c0_21 = arith.constant 0 : index
    %36 = vector.load %arg2[%c7, %c0_20, %c0_21] : memref<9x8x4xf32, #tpu.memory_space<vmem>>, vector<1x8x4xf32>
    %37 = vector.shape_cast %36 : vector<1x8x4xf32> to vector<8x4xf32>
    %c8 = arith.constant 8 : index
    %c0_22 = arith.constant 0 : index
    %c0_23 = arith.constant 0 : index
    %38 = vector.load %arg2[%c8, %c0_22, %c0_23] : memref<9x8x4xf32, #tpu.memory_space<vmem>>, vector<1x8x4xf32>
    %39 = vector.shape_cast %38 : vector<1x8x4xf32> to vector<8x4xf32>
    %c0_24 = arith.constant 0 : index
    %c0_25 = arith.constant 0 : index
    %c0_26 = arith.constant 0 : index
    %40 = vector.load %arg1[%c0_24, %c0_25, %c0_26] : memref<2x4x256xf32, #tpu.memory_space<vmem>>, vector<1x4x256xf32>
    %41 = vector.shape_cast %40 : vector<1x4x256xf32> to vector<4x256xf32>
    %c17_i32 = arith.constant 17 : i32
    %42 = tpu.dynamic_rotate %41 by %c17_i32 dim 1 : vector<4x256xf32>, i32 -> vector<4x256xf32>
    %cst = arith.constant 0.000000e+00 : f32
    %43 = vector.shape_cast %18 : vector<1x256xi1> to vector<1x256xi1>
    %44 = vector.broadcast %43 : vector<1x256xi1> to vector<4x256xi1>
    %45 = vector.broadcast %cst : f32 to vector<4x256xf32>
    %46 = arith.select %44, %42, %45 : vector<4x256xi1>, vector<4x256xf32>
    %cst_27 = arith.constant dense<0.000000e+00> : vector<8x256xf32>
    %47 = tpu.matmul %23, %46, %cst_27 {dimension_numbers = #tpu.dot_dimension_numbers<[1], [0], [0], [1], [0, 0, 1, 1], [], []>} : vector<8x4xf32>, vector<4x256xf32>, vector<8x256xf32> -> vector<8x256xf32>
    %c16_i32_28 = arith.constant 16 : i32
    %48 = tpu.dynamic_rotate %41 by %c16_i32_28 dim 1 : vector<4x256xf32>, i32 -> vector<4x256xf32>
    %cst_29 = arith.constant dense<0.000000e+00> : vector<8x256xf32>
    %49 = tpu.matmul %25, %48, %cst_29 {dimension_numbers = #tpu.dot_dimension_numbers<[1], [0], [0], [1], [0, 0, 1, 1], [], []>} : vector<8x4xf32>, vector<4x256xf32>, vector<8x256xf32> -> vector<8x256xf32>
    %50 = arith.addf %47, %49 : vector<8x256xf32>
    %c15_i32 = arith.constant 15 : i32
    %51 = tpu.dynamic_rotate %41 by %c15_i32 dim 1 : vector<4x256xf32>, i32 -> vector<4x256xf32>
    %cst_30 = arith.constant 0.000000e+00 : f32
    %52 = vector.shape_cast %20 : vector<1x256xi1> to vector<1x256xi1>
    %53 = vector.broadcast %52 : vector<1x256xi1> to vector<4x256xi1>
    %54 = vector.broadcast %cst_30 : f32 to vector<4x256xf32>
    %55 = arith.select %53, %51, %54 : vector<4x256xi1>, vector<4x256xf32>
    %cst_31 = arith.constant dense<0.000000e+00> : vector<8x256xf32>
    %56 = tpu.matmul %27, %55, %cst_31 {dimension_numbers = #tpu.dot_dimension_numbers<[1], [0], [0], [1], [0, 0, 1, 1], [], []>} : vector<8x4xf32>, vector<4x256xf32>, vector<8x256xf32> -> vector<8x256xf32>
    %57 = arith.addf %50, %56 : vector<8x256xf32>
    %c1_i32_32 = arith.constant 1 : i32
    %58 = tpu.dynamic_rotate %41 by %c1_i32_32 dim 1 : vector<4x256xf32>, i32 -> vector<4x256xf32>
    %cst_33 = arith.constant 0.000000e+00 : f32
    %59 = vector.shape_cast %18 : vector<1x256xi1> to vector<1x256xi1>
    %60 = vector.broadcast %59 : vector<1x256xi1> to vector<4x256xi1>
    %61 = vector.broadcast %cst_33 : f32 to vector<4x256xf32>
    %62 = arith.select %60, %58, %61 : vector<4x256xi1>, vector<4x256xf32>
    %cst_34 = arith.constant dense<0.000000e+00> : vector<8x256xf32>
    %63 = tpu.matmul %29, %62, %cst_34 {dimension_numbers = #tpu.dot_dimension_numbers<[1], [0], [0], [1], [0, 0, 1, 1], [], []>} : vector<8x4xf32>, vector<4x256xf32>, vector<8x256xf32> -> vector<8x256xf32>
    %64 = arith.addf %57, %63 : vector<8x256xf32>
    %cst_35 = arith.constant dense<0.000000e+00> : vector<8x256xf32>
    %65 = tpu.matmul %31, %41, %cst_35 {dimension_numbers = #tpu.dot_dimension_numbers<[1], [0], [0], [1], [0, 0, 1, 1], [], []>} : vector<8x4xf32>, vector<4x256xf32>, vector<8x256xf32> -> vector<8x256xf32>
    %66 = arith.addf %64, %65 : vector<8x256xf32>
    %c255_i32 = arith.constant 255 : i32
    %67 = tpu.dynamic_rotate %41 by %c255_i32 dim 1 : vector<4x256xf32>, i32 -> vector<4x256xf32>
    %cst_36 = arith.constant 0.000000e+00 : f32
    %68 = vector.shape_cast %20 : vector<1x256xi1> to vector<1x256xi1>
    %69 = vector.broadcast %68 : vector<1x256xi1> to vector<4x256xi1>
    %70 = vector.broadcast %cst_36 : f32 to vector<4x256xf32>
    %71 = arith.select %69, %67, %70 : vector<4x256xi1>, vector<4x256xf32>
    %cst_37 = arith.constant dense<0.000000e+00> : vector<8x256xf32>
    %72 = tpu.matmul %33, %71, %cst_37 {dimension_numbers = #tpu.dot_dimension_numbers<[1], [0], [0], [1], [0, 0, 1, 1], [], []>} : vector<8x4xf32>, vector<4x256xf32>, vector<8x256xf32> -> vector<8x256xf32>
    %73 = arith.addf %66, %72 : vector<8x256xf32>
    %c241_i32 = arith.constant 241 : i32
    %74 = tpu.dynamic_rotate %41 by %c241_i32 dim 1 : vector<4x256xf32>, i32 -> vector<4x256xf32>
    %cst_38 = arith.constant 0.000000e+00 : f32
    %75 = vector.shape_cast %18 : vector<1x256xi1> to vector<1x256xi1>
    %76 = vector.broadcast %75 : vector<1x256xi1> to vector<4x256xi1>
    %77 = vector.broadcast %cst_38 : f32 to vector<4x256xf32>
    %78 = arith.select %76, %74, %77 : vector<4x256xi1>, vector<4x256xf32>
    %cst_39 = arith.constant dense<0.000000e+00> : vector<8x256xf32>
    %79 = tpu.matmul %35, %78, %cst_39 {dimension_numbers = #tpu.dot_dimension_numbers<[1], [0], [0], [1], [0, 0, 1, 1], [], []>} : vector<8x4xf32>, vector<4x256xf32>, vector<8x256xf32> -> vector<8x256xf32>
    %80 = arith.addf %73, %79 : vector<8x256xf32>
    %c240_i32 = arith.constant 240 : i32
    %81 = tpu.dynamic_rotate %41 by %c240_i32 dim 1 : vector<4x256xf32>, i32 -> vector<4x256xf32>
    %cst_40 = arith.constant dense<0.000000e+00> : vector<8x256xf32>
    %82 = tpu.matmul %37, %81, %cst_40 {dimension_numbers = #tpu.dot_dimension_numbers<[1], [0], [0], [1], [0, 0, 1, 1], [], []>} : vector<8x4xf32>, vector<4x256xf32>, vector<8x256xf32> -> vector<8x256xf32>
    %83 = arith.addf %80, %82 : vector<8x256xf32>
    %c239_i32 = arith.constant 239 : i32
    %84 = tpu.dynamic_rotate %41 by %c239_i32 dim 1 : vector<4x256xf32>, i32 -> vector<4x256xf32>
    %cst_41 = arith.constant 0.000000e+00 : f32
    %85 = vector.shape_cast %20 : vector<1x256xi1> to vector<1x256xi1>
    %86 = vector.broadcast %85 : vector<1x256xi1> to vector<4x256xi1>
    %87 = vector.broadcast %cst_41 : f32 to vector<4x256xf32>
    %88 = arith.select %86, %84, %87 : vector<4x256xi1>, vector<4x256xf32>
    %cst_42 = arith.constant dense<0.000000e+00> : vector<8x256xf32>
    %89 = tpu.matmul %39, %88, %cst_42 {dimension_numbers = #tpu.dot_dimension_numbers<[1], [0], [0], [1], [0, 0, 1, 1], [], []>} : vector<8x4xf32>, vector<4x256xf32>, vector<8x256xf32> -> vector<8x256xf32>
    %90 = arith.addf %83, %89 : vector<8x256xf32>
    %91 = vector.broadcast %21 : vector<8x1xf32> to vector<8x256xf32>
    %92 = arith.addf %90, %91 : vector<8x256xf32>
    %cst_43 = arith.constant 0.000000e+00 : f32
    %93 = vector.broadcast %cst_43 : f32 to vector<8x256xf32>
    %94 = arith.cmpf ogt, %92, %93 : vector<8x256xf32>
    %cst_44 = arith.constant 0.00999999977 : f32
    %95 = vector.broadcast %cst_44 : f32 to vector<8x256xf32>
    %96 = arith.mulf %95, %92 : vector<8x256xf32>
    %97 = arith.select %94, %92, %96 : vector<8x256xi1>, vector<8x256xf32>
    %c0_45 = arith.constant 0 : index
    %c0_46 = arith.constant 0 : index
    %c0_47 = arith.constant 0 : index
    %98 = vector.load %arg4[%c0_45, %c0_46, %c0_47] : memref<2x8x256xf32, #tpu.memory_space<vmem>>, vector<1x8x256xf32>
    %99 = vector.shape_cast %98 : vector<1x8x256xf32> to vector<8x256xf32>
    %100 = vector.shape_cast %97 : vector<8x256xf32> to vector<1x8x256xf32>
    tpu.vector_store %arg4[%c0_45, %c0_46, %c0_47], %100 {strides = array<i32>} : memref<2x8x256xf32, #tpu.memory_space<vmem>>, vector<1x8x256xf32>,
    %c1_48 = arith.constant 1 : index
    %c0_49 = arith.constant 0 : index
    %c0_50 = arith.constant 0 : index
    %101 = vector.load %arg1[%c1_48, %c0_49, %c0_50] : memref<2x4x256xf32, #tpu.memory_space<vmem>>, vector<1x4x256xf32>
    %102 = vector.shape_cast %101 : vector<1x4x256xf32> to vector<4x256xf32>
    %c17_i32_51 = arith.constant 17 : i32
    %103 = tpu.dynamic_rotate %102 by %c17_i32_51 dim 1 : vector<4x256xf32>, i32 -> vector<4x256xf32>
    %cst_52 = arith.constant 0.000000e+00 : f32
    %104 = vector.shape_cast %18 : vector<1x256xi1> to vector<1x256xi1>
    %105 = vector.broadcast %104 : vector<1x256xi1> to vector<4x256xi1>
    %106 = vector.broadcast %cst_52 : f32 to vector<4x256xf32>
    %107 = arith.select %105, %103, %106 : vector<4x256xi1>, vector<4x256xf32>
    %cst_53 = arith.constant dense<0.000000e+00> : vector<8x256xf32>
    %108 = tpu.matmul %23, %107, %cst_53 {dimension_numbers = #tpu.dot_dimension_numbers<[1], [0], [0], [1], [0, 0, 1, 1], [], []>} : vector<8x4xf32>, vector<4x256xf32>, vector<8x256xf32> -> vector<8x256xf32>
    %c16_i32_54 = arith.constant 16 : i32
    %109 = tpu.dynamic_rotate %102 by %c16_i32_54 dim 1 : vector<4x256xf32>, i32 -> vector<4x256xf32>
    %cst_55 = arith.constant dense<0.000000e+00> : vector<8x256xf32>
    %110 = tpu.matmul %25, %109, %cst_55 {dimension_numbers = #tpu.dot_dimension_numbers<[1], [0], [0], [1], [0, 0, 1, 1], [], []>} : vector<8x4xf32>, vector<4x256xf32>, vector<8x256xf32> -> vector<8x256xf32>
    %111 = arith.addf %108, %110 : vector<8x256xf32>
    %c15_i32_56 = arith.constant 15 : i32
    %112 = tpu.dynamic_rotate %102 by %c15_i32_56 dim 1 : vector<4x256xf32>, i32 -> vector<4x256xf32>
    %cst_57 = arith.constant 0.000000e+00 : f32
    %113 = vector.shape_cast %20 : vector<1x256xi1> to vector<1x256xi1>
    %114 = vector.broadcast %113 : vector<1x256xi1> to vector<4x256xi1>
    %115 = vector.broadcast %cst_57 : f32 to vector<4x256xf32>
    %116 = arith.select %114, %112, %115 : vector<4x256xi1>, vector<4x256xf32>
    %cst_58 = arith.constant dense<0.000000e+00> : vector<8x256xf32>
    %117 = tpu.matmul %27, %116, %cst_58 {dimension_numbers = #tpu.dot_dimension_numbers<[1], [0], [0], [1], [0, 0, 1, 1], [], []>} : vector<8x4xf32>, vector<4x256xf32>, vector<8x256xf32> -> vector<8x256xf32>
    %118 = arith.addf %111, %117 : vector<8x256xf32>
    %c1_i32_59 = arith.constant 1 : i32
    %119 = tpu.dynamic_rotate %102 by %c1_i32_59 dim 1 : vector<4x256xf32>, i32 -> vector<4x256xf32>
    %cst_60 = arith.constant 0.000000e+00 : f32
    %120 = vector.shape_cast %18 : vector<1x256xi1> to vector<1x256xi1>
    %121 = vector.broadcast %120 : vector<1x256xi1> to vector<4x256xi1>
    %122 = vector.broadcast %cst_60 : f32 to vector<4x256xf32>
    %123 = arith.select %121, %119, %122 : vector<4x256xi1>, vector<4x256xf32>
    %cst_61 = arith.constant dense<0.000000e+00> : vector<8x256xf32>
    %124 = tpu.matmul %29, %123, %cst_61 {dimension_numbers = #tpu.dot_dimension_numbers<[1], [0], [0], [1], [0, 0, 1, 1], [], []>} : vector<8x4xf32>, vector<4x256xf32>, vector<8x256xf32> -> vector<8x256xf32>
    %125 = arith.addf %118, %124 : vector<8x256xf32>
    %cst_62 = arith.constant dense<0.000000e+00> : vector<8x256xf32>
    %126 = tpu.matmul %31, %102, %cst_62 {dimension_numbers = #tpu.dot_dimension_numbers<[1], [0], [0], [1], [0, 0, 1, 1], [], []>} : vector<8x4xf32>, vector<4x256xf32>, vector<8x256xf32> -> vector<8x256xf32>
    %127 = arith.addf %125, %126 : vector<8x256xf32>
    %c255_i32_63 = arith.constant 255 : i32
    %128 = tpu.dynamic_rotate %102 by %c255_i32_63 dim 1 : vector<4x256xf32>, i32 -> vector<4x256xf32>
    %cst_64 = arith.constant 0.000000e+00 : f32
    %129 = vector.shape_cast %20 : vector<1x256xi1> to vector<1x256xi1>
    %130 = vector.broadcast %129 : vector<1x256xi1> to vector<4x256xi1>
    %131 = vector.broadcast %cst_64 : f32 to vector<4x256xf32>
    %132 = arith.select %130, %128, %131 : vector<4x256xi1>, vector<4x256xf32>
    %cst_65 = arith.constant dense<0.000000e+00> : vector<8x256xf32>
    %133 = tpu.matmul %33, %132, %cst_65 {dimension_numbers = #tpu.dot_dimension_numbers<[1], [0], [0], [1], [0, 0, 1, 1], [], []>} : vector<8x4xf32>, vector<4x256xf32>, vector<8x256xf32> -> vector<8x256xf32>
    %134 = arith.addf %127, %133 : vector<8x256xf32>
    %c241_i32_66 = arith.constant 241 : i32
    %135 = tpu.dynamic_rotate %102 by %c241_i32_66 dim 1 : vector<4x256xf32>, i32 -> vector<4x256xf32>
    %cst_67 = arith.constant 0.000000e+00 : f32
    %136 = vector.shape_cast %18 : vector<1x256xi1> to vector<1x256xi1>
    %137 = vector.broadcast %136 : vector<1x256xi1> to vector<4x256xi1>
    %138 = vector.broadcast %cst_67 : f32 to vector<4x256xf32>
    %139 = arith.select %137, %135, %138 : vector<4x256xi1>, vector<4x256xf32>
    %cst_68 = arith.constant dense<0.000000e+00> : vector<8x256xf32>
    %140 = tpu.matmul %35, %139, %cst_68 {dimension_numbers = #tpu.dot_dimension_numbers<[1], [0], [0], [1], [0, 0, 1, 1], [], []>} : vector<8x4xf32>, vector<4x256xf32>, vector<8x256xf32> -> vector<8x256xf32>
    %141 = arith.addf %134, %140 : vector<8x256xf32>
    %c240_i32_69 = arith.constant 240 : i32
    %142 = tpu.dynamic_rotate %102 by %c240_i32_69 dim 1 : vector<4x256xf32>, i32 -> vector<4x256xf32>
    %cst_70 = arith.constant dense<0.000000e+00> : vector<8x256xf32>
    %143 = tpu.matmul %37, %142, %cst_70 {dimension_numbers = #tpu.dot_dimension_numbers<[1], [0], [0], [1], [0, 0, 1, 1], [], []>} : vector<8x4xf32>, vector<4x256xf32>, vector<8x256xf32> -> vector<8x256xf32>
    %144 = arith.addf %141, %143 : vector<8x256xf32>
    %c239_i32_71 = arith.constant 239 : i32
    %145 = tpu.dynamic_rotate %102 by %c239_i32_71 dim 1 : vector<4x256xf32>, i32 -> vector<4x256xf32>
    %cst_72 = arith.constant 0.000000e+00 : f32
    %146 = vector.shape_cast %20 : vector<1x256xi1> to vector<1x256xi1>
    %147 = vector.broadcast %146 : vector<1x256xi1> to vector<4x256xi1>
    %148 = vector.broadcast %cst_72 : f32 to vector<4x256xf32>
    %149 = arith.select %147, %145, %148 : vector<4x256xi1>, vector<4x256xf32>
    %cst_73 = arith.constant dense<0.000000e+00> : vector<8x256xf32>
    %150 = tpu.matmul %39, %149, %cst_73 {dimension_numbers = #tpu.dot_dimension_numbers<[1], [0], [0], [1], [0, 0, 1, 1], [], []>} : vector<8x4xf32>, vector<4x256xf32>, vector<8x256xf32> -> vector<8x256xf32>
    %151 = arith.addf %144, %150 : vector<8x256xf32>
    %152 = vector.broadcast %21 : vector<8x1xf32> to vector<8x256xf32>
    %153 = arith.addf %151, %152 : vector<8x256xf32>
    %cst_74 = arith.constant 0.000000e+00 : f32
    %154 = vector.broadcast %cst_74 : f32 to vector<8x256xf32>
    %155 = arith.cmpf ogt, %153, %154 : vector<8x256xf32>
    %cst_75 = arith.constant 0.00999999977 : f32
    %156 = vector.broadcast %cst_75 : f32 to vector<8x256xf32>
    %157 = arith.mulf %156, %153 : vector<8x256xf32>
    %158 = arith.select %155, %153, %157 : vector<8x256xi1>, vector<8x256xf32>
    %c1_76 = arith.constant 1 : index
    %c0_77 = arith.constant 0 : index
    %c0_78 = arith.constant 0 : index
    %159 = vector.load %arg4[%c1_76, %c0_77, %c0_78] : memref<2x8x256xf32, #tpu.memory_space<vmem>>, vector<1x8x256xf32>
    %160 = vector.shape_cast %159 : vector<1x8x256xf32> to vector<8x256xf32>
    %161 = vector.shape_cast %158 : vector<8x256xf32> to vector<1x8x256xf32>
    tpu.vector_store %arg4[%c1_76, %c0_77, %c0_78], %161 {strides = array<i32>} : memref<2x8x256xf32, #tpu.memory_space<vmem>>, vector<1x8x256xf32>,
    return
  }
  func.func @transform_0(%arg0: i32) -> (i32, i32, i32) {
    %c0_i32 = arith.constant 0 : i32
    %c0_i32_0 = arith.constant 0 : i32
    %c0_i32_1 = arith.constant 0 : i32
    return %arg0, %c0_i32, %c0_i32_0 : i32, i32, i32
  }
  func.func @transform_1(%arg0: i32) -> (i32, i32, i32) {
    %c0_i32 = arith.constant 0 : i32
    %c0_i32_0 = arith.constant 0 : i32
    %c0_i32_1 = arith.constant 0 : i32
    %c0_i32_2 = arith.constant 0 : i32
    return %c0_i32, %c0_i32_0, %c0_i32_1 : i32, i32, i32
  }
  func.func @transform_2(%arg0: i32) -> (i32, i32) {
    %c0_i32 = arith.constant 0 : i32
    %c0_i32_0 = arith.constant 0 : i32
    %c0_i32_1 = arith.constant 0 : i32
    return %c0_i32, %c0_i32_0 : i32, i32
  }
  func.func @transform_3(%arg0: i32) -> (i32, i32, i32) {
    %c0_i32 = arith.constant 0 : i32
    %c0_i32_0 = arith.constant 0 : i32
    %c0_i32_1 = arith.constant 0 : i32
    return %arg0, %c0_i32, %c0_i32_0 : i32, i32, i32
  }
}

</mosaic_0001>

<bundles_post_ra>
// kernel: tpu_custom_call.1
= control target key start
LH: loop header
LB: loop body
LE: loop exit
PB: predicated region body
PF: predicated region fallthrough
CT: control target
= control target key end

     0   :  { %s1790_s14 = smov 17   ;;  %s1791_s15 = smov 16   ;;  %s2166_s0 = inlined_call_operand.vmem [shape: f32[2,4,256], index: 0, kind: input, shape index: {}]   ;;  %s2167_s1 = inlined_call_operand.vmem [shape: f32[9,8,4], index: 1, kind: input, shape index: {}]   ;;  %s2168_s2 = inlined_call_operand.vmem [shape: f32[8,1], index: 2, kind: input, shape index: {}]   ;;  %s2169_s3 = inlined_call_operand.hbm [shape: f32[2,8,256], index: 3, kind: output, shape index: {}]  }
   0x1   :  { %v1825_v0 = vld [vmem:[%s2166_s0] sm:$0xff] }
   0x2   :  { %68 = vrot.lane.b32.xlu1 %v1825_v0, %s1790_s14  ;;  %81 = vrot.lane.b32.xlu0 %v1825_v0, %s1791_s15  ;;  %v1833_v1 = vcombine.high %v1825_v0, %v1825_v0 }
   0x3   :  { %8 = vsyncpa [#allocation3], 0  ;;  %v1792_v2 = vmov 0.0   ;;  %s1793_s16 = smov 15   ;;  %s1794_s17 = smov 1   ;;  %v1854_v3 = vld [vmem:[%s2166_s0 + $0x8] sm:$0xff]  ;;  %v15_v7 = vlaneseq }
   0x4   :  { %163 = vmatprep.mubr.f32.mxu0 %v1792_v2  ;;  %243 = vmatprep.mubr.f32.mxu1 %v1792_v2  ;;  %s1795_s18 = smov 127   ;;  %s1796_s19 = smov 113   ;;  %v1860_v4 = vcombine.high %v1854_v3, %v1854_v3  ;;  %v1799_v5 = vmov 0   ;;  %v46_v6 = vld [vmem:[%s2168_s2] sm:$0xff]  ;;  %vm92_vm2 = vcmask 1043456   ;;  %vm88_vm5 = vcmask 31744  }
   0x5   :  { %s1797_s20 = smov 112   ;;  %s1798_s23 = smov 111   ;;  %1765 = vset.pattern.permute.xlu0 %v1799_v5  ;;  %v1885_v8 = vand.u32 127, %v15_v7  ;;  %v1910_v22 = vld [vmem:[%s2167_s1 + $0x8] sm:$0xff]  ;;  %v1921_v25 = vld [vmem:[%s2167_s1] sm:$0xff]  ;;  %v1952_v34 = vld [vmem:[%s2167_s1 + $0x10] sm:$0xff] }
   0x6   :  { %70 = vrot.lane.b32.xlu1 %v1833_v1, %s1790_s14  ;;  %83 = vrot.lane.b32.xlu0 %v1833_v1, %s1791_s15  ;;  %v1972_v41 = vld [vmem:[%s2167_s1 + $0x18] sm:$0xff]  ;;  %v1980_v42 = vld [vmem:[%s2167_s1 + $0x20] sm:$0xff] }
   0x7   :  { %v17_v9 = vadd.s32 128, %v1885_v8  ;;  %v22_v11 = vand.u32 15, %v1885_v8  ;;  %vm72_vm0 = vcmp.lt.s32.totalorder %v1885_v8, 17  ;;  %vm85_vm1 = vcmp.lt.s32.totalorder %v1885_v8, 16  ;;  %v2001_v49 = vld [vmem:[%s2167_s1 + $0x28] sm:$0xff]  ;;  %v2020_v56 = vld [vmem:[%s2167_s1 + $0x30] sm:$0xff] }
   0x8   :  { %vm254_vm6 = vcmp.lt.s32.totalorder %v1885_v8, 15  ;;  %vm349_vm9 = vcmp.lt.s32.totalorder %v1885_v8, 1  ;;  %vm520_vm10 = vcmp.lt.s32.totalorder %v1885_v8, 127  ;;  %vm611_vm11 = vcmp.lt.s32.totalorder %v1885_v8, 113  ;;  %v2034_v61 = vld [vmem:[%s2167_s1 + $0x38] sm:$0xff]  ;;  %v2054_v7 = vld [vmem:[%s2167_s1 + $0x40] sm:$0xff] }
   0x9   :  { %v29_v10 = vand.u32 15, %v17_v9  ;;  %vm1895_vm4 = vcmp.ge.s32.totalorder %v22_v11, 1  ;;  %vm1925_vm7 = vcmp.le.s32.totalorder %v22_v11, 14  ;;  %vm702_vm12 = vcmp.lt.s32.totalorder %v1885_v8, 112  ;;  %s1800_s1 = smov [#allocation2]  }
   0xa   :  { %252 = vrot.lane.b32.xlu1 %v1833_v1, %s1793_s16  ;;  %250 = vrot.lane.b32.xlu0 %v1825_v0, %s1793_s16  ;;  %vm791_vm13 = vcmp.lt.s32.totalorder %v1885_v8, 111 }
   0xb   :  { %vm1891_vm3 = vcmp.ge.s32.totalorder %v29_v10, 1  ;;  %vm1929_vm8 = vcmp.le.s32.totalorder %v29_v10, 14 }
   0xe   :  { %347 = vrot.lane.b32.xlu1 %v1833_v1, %s1794_s17  ;;  %345 = vrot.lane.b32.xlu0 %v1825_v0, %s1794_s17 }
  0x12   :  { %518 = vrot.lane.b32.xlu1 %v1833_v1, %s1795_s18  ;;  %516 = vrot.lane.b32.xlu0 %v1825_v0, %s1795_s18 }
  0x16   :  { %609 = vrot.lane.b32.xlu1 %v1833_v1, %s1796_s19  ;;  %607 = vrot.lane.b32.xlu0 %v1825_v0, %s1796_s19 }
  0x1a   :  { %700 = vrot.lane.b32.xlu1 %v1833_v1, %s1797_s20  ;;  %698 = vrot.lane.b32.xlu0 %v1825_v0, %s1797_s20 }
  0x1e   :  { %789 = vrot.lane.b32.xlu1 %v1833_v1, %s1798_s23  ;;  %787 = vrot.lane.b32.xlu0 %v1825_v0, %s1798_s23 }
  0x22   :  { %908 = vrot.lane.b32.xlu1 %v1860_v4, %s1791_s15  ;;  %906 = vrot.lane.b32.xlu0 %v1854_v3, %s1791_s15 }
  0x26   :  { %900 = vrot.lane.b32.xlu1 %v1860_v4, %s1790_s14  ;;  %898 = vrot.lane.b32.xlu0 %v1854_v3, %s1790_s14 }
  0x2a   :  { %1068 = vrot.lane.b32.xlu1 %v1860_v4, %s1793_s16  ;;  %1066 = vrot.lane.b32.xlu0 %v1854_v3, %s1793_s16  ;;  %s1679_s16 = sshll.u32 %s1800_s1, 4  ;;  %s1680_s16 = int_to_ptr.vmem [resolvable:$true] %s1679_s16 }
  0x2b   :  { %p1773_p1 = scmp.lt.s32.totalorder %s1680_s16, %s1680_s16 }
  0x2e   :  { %1155 = vrot.lane.b32.xlu1 %v1860_v4, %s1794_s17  ;;  %1153 = vrot.lane.b32.xlu0 %v1854_v3, %s1794_s17  ;;  %s1768_s17 = scalar_lea.vmem %s1680_s16, 512 }
  0x2f   :  { %p1769_p0 = scmp.ne.s32.totalorder %s1680_s16, %s1768_s17  ;;  %p1774_p2 = scmp.lt.s32.totalorder %s1768_s17, %s1768_s17 }
  0x31   :  { %p1775_p3 = por %p1774_p2, %p1773_p1 }
  0x32   :  { %1319 = vrot.lane.b32.xlu1 %v1860_v4, %s1795_s18  ;;  %1317 = vrot.lane.b32.xlu0 %v1854_v3, %s1795_s18 }
  0x33   :  { %p1776_p4 = pnand %p1775_p3, %p1769_p0 }
  0x36   :  { %1406 = vrot.lane.b32.xlu1 %v1860_v4, %s1796_s19  ;;  %1404 = vrot.lane.b32.xlu0 %v1854_v3, %s1796_s19 }
  0x3a   :  { %1493 = vrot.lane.b32.xlu1 %v1860_v4, %s1797_s20  ;;  %1491 = vrot.lane.b32.xlu0 %v1854_v3, %s1797_s20 }
  0x3e   :  { %1578 = vrot.lane.b32.xlu1 %v1860_v4, %s1798_s23  ;;  %1576 = vrot.lane.b32.xlu0 %v1854_v3, %s1798_s23 }
  0x42   :  { %880 = vperm.xlu0 %1765, %v46_v6  }
  0x74   :  { %v69_v12 = vpop.permute.xlu1 %68  ;;  %v82_v13 = vpop.permute.xlu0 %81 }
  0x78   :  { %v71_v16 = vpop.permute.xlu1 %70  ;;  %v84_v17 = vpop.permute.xlu0 %83 }
  0x79   :  { %v74_v18 = vsel %vm72_vm0, %v71_v16, %v69_v12  ;;  %v86_v19 = vsel %vm85_vm1, %v82_v13, %v84_v17  ;;  %v87_v20 = vsel %vm85_vm1, %v84_v17, %v82_v13  ;;  %v73_v21 = vsel %vm72_vm0, %v69_v12, %v71_v16 }
  0x7a   :  { %1698 = vmatprep.subr.msk.mxu0 %vm92_vm2, %v86_v19  ;;  %v80_v23 = vsel %vm1891_vm3, %v73_v21, 0.0  ;;  %v79_v24 = vsel %vm1895_vm4, %v74_v18, 0.0 }
  0x7b   :  { %1699 = vmatpush1.msk.msra.mxu0 %vm92_vm2, %v87_v20  ;;  %1701 = vmatprep.subr.msk.mxu1 %vm92_vm2, %v80_v23 }
  0x7c   :  { %v253_v28 = vpop.permute.xlu1 %252  ;;  %v251_v29 = vpop.permute.xlu0 %250  ;;  %1702 = vmatpush1.msk.msra.mxu1 %vm92_vm2, %v79_v24  ;;  %1700 = vmatmul.mubr.msk.f32.vlgmr.msra.gmra.mxu0 %vm88_vm5, %v1910_v22 }
  0x7d   :  { %v255_v30 = vsel %vm254_vm6, %v251_v29, %v253_v28  ;;  %v256_v31 = vsel %vm254_vm6, %v253_v28, %v251_v29  ;;  %1703 = vmatmul.mubr.msk.f32.vlgmr.msra.gmra.mxu1 %vm88_vm5, %v1921_v25  ;;  %336 = vmatprep.mubr.f32.mxu0 %v1792_v2 }
  0x7e   :  { %v261_v32 = vsel %vm1925_vm7, %v256_v31, 0.0  ;;  %v262_v33 = vsel %vm1929_vm8, %v255_v30, 0.0  ;;  %427 = vmatprep.mubr.f32.mxu1 %v1792_v2 }
  0x7f   :  { %1704 = vmatprep.subr.msk.mxu0 %vm92_vm2, %v262_v33 }
  0x80   :  { %v348_v35 = vpop.permute.xlu1 %347  ;;  %v346_v36 = vpop.permute.xlu0 %345  ;;  %1705 = vmatpush1.msk.msra.mxu0 %vm92_vm2, %v261_v32 }
  0x81   :  { %v350_v37 = vsel %vm349_vm9, %v346_v36, %v348_v35  ;;  %v351_v38 = vsel %vm349_vm9, %v348_v35, %v346_v36  ;;  %1706 = vmatmul.mubr.msk.f32.vlgmr.msra.gmra.mxu0 %vm88_vm5, %v1952_v34  ;;  %1710 = vmatprep.subr.msk.mxu0 %vm92_vm2, %v1833_v1 }
  0x82   :  { %v352_v39 = vsel %vm1895_vm4, %v351_v38, 0.0  ;;  %v353_v40 = vsel %vm1891_vm3, %v350_v37, 0.0  ;;  %1711 = vmatpush1.msk.msra.mxu0 %vm92_vm2, %v1825_v0  ;;  %507 = vmatprep.mubr.f32.mxu0 %v1792_v2 }
  0x83   :  { %1707 = vmatprep.subr.msk.mxu1 %vm92_vm2, %v353_v40 }
  0x84   :  { %v519_v43 = vpop.permute.xlu1 %518  ;;  %v517_v44 = vpop.permute.xlu0 %516  ;;  %1708 = vmatpush1.msk.msra.mxu1 %vm92_vm2, %v352_v39 }
  0x85   :  { %v521_v45 = vsel %vm520_vm10, %v517_v44, %v519_v43  ;;  %v522_v46 = vsel %vm520_vm10, %v519_v43, %v517_v44  ;;  %1709 = vmatmul.mubr.msk.f32.vlgmr.msra.gmra.mxu1 %vm88_vm5, %v1972_v41  ;;  %1712 = vmatmul.mubr.msk.f32.vlgmr.msra.gmra.mxu0 %vm88_vm5, %v1980_v42 }
  0x86   :  { %v523_v47 = vsel %vm1925_vm7, %v521_v45, 0.0  ;;  %v524_v48 = vsel %vm1929_vm8, %v522_v46, 0.0  ;;  %598 = vmatprep.mubr.f32.mxu1 %v1792_v2  ;;  %689 = vmatprep.mubr.f32.mxu0 %v1792_v2 }
  0x87   :  { %1713 = vmatprep.subr.msk.mxu1 %vm92_vm2, %v524_v48 }
  0x88   :  { %v610_v50 = vpop.permute.xlu1 %609  ;;  %v608_v51 = vpop.permute.xlu0 %607  ;;  %1714 = vmatpush1.msk.msra.mxu1 %vm92_vm2, %v523_v47 }
  0x89   :  { %v612_v52 = vsel %vm611_vm11, %v608_v51, %v610_v50  ;;  %v613_v53 = vsel %vm611_vm11, %v610_v50, %v608_v51  ;;  %1715 = vmatmul.mubr.msk.f32.vlgmr.msra.gmra.mxu1 %vm88_vm5, %v2001_v49 }
  0x8a   :  { %v614_v54 = vsel %vm1895_vm4, %v612_v52, 0.0  ;;  %v615_v55 = vsel %vm1891_vm3, %v613_v53, 0.0  ;;  %778 = vmatprep.mubr.f32.mxu1 %v1792_v2 }
  0x8b   :  { %1716 = vmatprep.subr.msk.mxu0 %vm92_vm2, %v615_v55 }
  0x8c   :  { %v701_v57 = vpop.permute.xlu1 %700  ;;  %v699_v58 = vpop.permute.xlu0 %698  ;;  %1717 = vmatpush1.msk.msra.mxu0 %vm92_vm2, %v614_v54 }
  0x8d   :  { %v703_v59 = vsel %vm702_vm12, %v699_v58, %v701_v57  ;;  %v704_v60 = vsel %vm702_vm12, %v701_v57, %v699_v58  ;;  %1718 = vmatmul.mubr.msk.f32.vlgmr.msra.gmra.mxu0 %vm88_vm5, %v2020_v56 }
  0x8e   :  { %1719 = vmatprep.subr.msk.mxu1 %vm92_vm2, %v704_v60  ;;  %869 = vmatprep.mubr.f32.mxu0 %v1792_v2 }
  0x8f   :  { %1720 = vmatpush1.msk.msra.mxu1 %vm92_vm2, %v703_v59 }
  0x90   :  { %v790_v62 = vpop.permute.xlu1 %789  ;;  %v788_v63 = vpop.permute.xlu0 %787  ;;  %1721 = vmatmul.mubr.msk.f32.vlgmr.msra.gmra.mxu1 %vm88_vm5, %v2034_v61 }
  0x91   :  { %v792_v0 = vsel %vm791_vm13, %v788_v63, %v790_v62  ;;  %v793_v1 = vsel %vm791_vm13, %v790_v62, %v788_v63  ;;  %982 = vmatprep.mubr.f32.mxu1 %v1792_v2 }
  0x92   :  { %v794_v5 = vsel %vm1925_vm7, %v792_v0, 0.0  ;;  %v795_v6 = vsel %vm1929_vm8, %v793_v1, 0.0 }
  0x93   :  { %1722 = vmatprep.subr.msk.mxu0 %vm92_vm2, %v795_v6 }
  0x94   :  { %v909_v9 = vpop.permute.xlu1 %908  ;;  %v907_v10 = vpop.permute.xlu0 %906  ;;  %1723 = vmatpush1.msk.msra.mxu0 %vm92_vm2, %v794_v5 }
  0x95   :  { %v910_v11 = vsel %vm85_vm1, %v907_v10, %v909_v9  ;;  %v911_v12 = vsel %vm85_vm1, %v909_v9, %v907_v10  ;;  %1724 = vmatmul.mubr.msk.f32.vlgmr.msra.gmra.mxu0 %vm88_vm5, %v2054_v7 }
  0x96   :  { %1726 = vmatprep.subr.msk.mxu1 %vm92_vm2, %v910_v11  ;;  %1059 = vmatprep.mubr.f32.mxu0 %v1792_v2 }
  0x97   :  { %1727 = vmatpush1.msk.msra.mxu1 %vm92_vm2, %v911_v12 }
  0x98   :  { %v901_v13 = vpop.permute.xlu1 %900  ;;  %v899_v16 = vpop.permute.xlu0 %898  ;;  %1728 = vmatmul.mubr.msk.f32.vlgmr.msra.gmra.mxu1 %vm88_vm5, %v1910_v22 }
  0x99   :  { %v902_v17 = vsel %vm72_vm0, %v899_v16, %v901_v13  ;;  %v903_v18 = vsel %vm72_vm0, %v901_v13, %v899_v16  ;;  %1144 = vmatprep.mubr.f32.mxu1 %v1792_v2 }
  0x9a   :  { %v904_v19 = vsel %vm1895_vm4, %v903_v18, 0.0  ;;  %v905_v20 = vsel %vm1891_vm3, %v902_v17, 0.0 }
  0x9b   :  { %1729 = vmatprep.subr.msk.mxu0 %vm92_vm2, %v905_v20 }
  0x9c   :  { %v1069_v21 = vpop.permute.xlu1 %1068  ;;  %v1067_v23 = vpop.permute.xlu0 %1066  ;;  %1730 = vmatpush1.msk.msra.mxu0 %vm92_vm2, %v904_v19 }
  0x9d   :  { %v1070_v22 = vsel %vm254_vm6, %v1067_v23, %v1069_v21  ;;  %v1071_v24 = vsel %vm254_vm6, %v1069_v21, %v1067_v23  ;;  %1731 = vmatmul.mubr.msk.f32.vlgmr.msra.gmra.mxu0 %vm88_vm5, %v1921_v25 }
  0x9e   :  { %v1072_v28 = vsel %vm1925_vm7, %v1071_v24, 0.0  ;;  %v1073_v29 = vsel %vm1929_vm8, %v1070_v22, 0.0  ;;  %1231 = vmatprep.mubr.f32.mxu0 %v1792_v2 }
  0x9f   :  { %1732 = vmatprep.subr.msk.mxu1 %vm92_vm2, %v1073_v29 }
  0xa0   :  { %v1156_v30 = vpop.permute.xlu1 %1155  ;;  %v1154_v31 = vpop.permute.xlu0 %1153  ;;  %1733 = vmatpush1.msk.msra.mxu1 %vm92_vm2, %v1072_v28 }
  0xa1   :  { %v1157_v32 = vsel %vm349_vm9, %v1154_v31, %v1156_v30  ;;  %v1158_v25 = vsel %vm349_vm9, %v1156_v30, %v1154_v31  ;;  %1734 = vmatmul.mubr.msk.f32.vlgmr.msra.gmra.mxu1 %vm88_vm5, %v1952_v34  ;;  %1738 = vmatprep.subr.msk.mxu1 %vm92_vm2, %v1860_v4 }
  0xa2   :  { %v1159_v33 = vsel %vm1895_vm4, %v1158_v25, 0.0  ;;  %v1160_v35 = vsel %vm1891_vm3, %v1157_v32, 0.0  ;;  %1739 = vmatpush1.msk.msra.mxu1 %vm92_vm2, %v1854_v3  ;;  %1308 = vmatprep.mubr.f32.mxu1 %v1792_v2 }
  0xa3   :  { %1735 = vmatprep.subr.msk.mxu0 %vm92_vm2, %v1160_v35 }
  0xa4   :  { %v1320_v36 = vpop.permute.xlu1 %1319  ;;  %v1318_v37 = vpop.permute.xlu0 %1317  ;;  %1736 = vmatpush1.msk.msra.mxu0 %vm92_vm2, %v1159_v33 }
  0xa5   :  { %v1321_v4 = vsel %vm520_vm10, %v1318_v37, %v1320_v36  ;;  %v1322_v34 = vsel %vm520_vm10, %v1320_v36, %v1318_v37  ;;  %1737 = vmatmul.mubr.msk.f32.vlgmr.msra.gmra.mxu0 %vm88_vm5, %v1972_v41  ;;  %1740 = vmatmul.mubr.msk.f32.vlgmr.msra.gmra.mxu1 %vm88_vm5, %v1980_v42 }
  0xa6   :  { %v1323_v3 = vsel %vm1925_vm7, %v1321_v4, 0.0  ;;  %v1324_v38 = vsel %vm1929_vm8, %v1322_v34, 0.0  ;;  %1395 = vmatprep.mubr.f32.mxu0 %v1792_v2  ;;  %1482 = vmatprep.mubr.f32.mxu1 %v1792_v2 }
  0xa7   :  { %1741 = vmatprep.subr.msk.mxu0 %vm92_vm2, %v1324_v38 }
  0xa8   :  { %v1407_v39 = vpop.permute.xlu1 %1406  ;;  %v1405_v40 = vpop.permute.xlu0 %1404  ;;  %1742 = vmatpush1.msk.msra.mxu0 %vm92_vm2, %v1323_v3 }
  0xa9   :  { %v1408_v41 = vsel %vm611_vm11, %v1405_v40, %v1407_v39  ;;  %v1409_v42 = vsel %vm611_vm11, %v1407_v39, %v1405_v40  ;;  %1743 = vmatmul.mubr.msk.f32.vlgmr.msra.gmra.mxu0 %vm88_vm5, %v2001_v49 }
  0xaa   :  { %v1410_v43 = vsel %vm1895_vm4, %v1408_v41, 0.0  ;;  %v1411_v44 = vsel %vm1891_vm3, %v1409_v42, 0.0  ;;  %1567 = vmatprep.mubr.f32.mxu0 %v1792_v2 }
  0xab   :  { %1744 = vmatprep.subr.msk.mxu1 %vm92_vm2, %v1411_v44 }
  0xac   :  { %v1494_v45 = vpop.permute.xlu1 %1493  ;;  %v1492_v46 = vpop.permute.xlu0 %1491  ;;  %1745 = vmatpush1.msk.msra.mxu1 %vm92_vm2, %v1410_v43 }
  0xad   :  { %v1495_v47 = vsel %vm702_vm12, %v1492_v46, %v1494_v45  ;;  %v1496_v48 = vsel %vm702_vm12, %v1494_v45, %v1492_v46  ;;  %1746 = vmatmul.mubr.msk.f32.vlgmr.msra.gmra.mxu1 %vm88_vm5, %v2020_v56 }
  0xae   :  { %1747 = vmatprep.subr.msk.mxu0 %vm92_vm2, %v1496_v48  ;;  %1654 = vmatprep.mubr.f32.mxu1 %v1792_v2 }
  0xaf   :  { %1748 = vmatpush1.msk.msra.mxu0 %vm92_vm2, %v1495_v47 }
  0xb0   :  { %v1579_v14 = vpop.permute.xlu1 %1578  ;;  %v1577_v15 = vpop.permute.xlu0 %1576  ;;  %1749 = vmatmul.mubr.msk.f32.vlgmr.msra.gmra.mxu0 %vm88_vm5, %v2034_v61 }
  0xb1   :  { %v1580_v49 = vsel %vm791_vm13, %v1577_v15, %v1579_v14  ;;  %v1581_v50 = vsel %vm791_vm13, %v1579_v14, %v1577_v15 }
  0xb2   :  { %v1582_v51 = vsel %vm1925_vm7, %v1580_v49, 0.0  ;;  %v1583_v52 = vsel %vm1929_vm8, %v1581_v50, 0.0 }
  0xb3   :  { %1750 = vmatprep.subr.msk.mxu1 %vm92_vm2, %v1583_v52 }
  0xb4   :  { %1751 = vmatpush1.msk.msra.mxu1 %vm92_vm2, %v1582_v51 }
  0xb5   :  { %1752 = vmatmul.mubr.msk.f32.vlgmr.msra.gmra.mxu1 %vm88_vm5, %v2054_v7 }
  0xbd   :  { %v881_v23 = vpop.permute.xlu0 %880 }
 0x13c   :  { %v165_v2 = vpop.f32.mrf.mxu0 }
 0x13d   :  { %v245_v53 = vpop.f32.mrf.mxu1 }
 0x13e   :  { %v167_v54 = vpop.f32.mrf.mxu0  ;;  %v246_v55 = vadd.f32 %v245_v53, %v165_v2 }
 0x13f   :  { %v247_v56 = vpop.f32.mrf.mxu1 }
 0x140   :  { %v248_v8 = vadd.f32 %v247_v56, %v167_v54 }
 0x141   :  { %v338_v57 = vpop.f32.mrf.mxu0 }
 0x142   :  { %v343_v58 = vadd.f32 %v338_v57, %v246_v55 }
 0x143   :  { %v340_v26 = vpop.f32.mrf.mxu0 }
 0x144   :  { %v344_v59 = vadd.f32 %v340_v26, %v248_v8 }
 0x145   :  { %v429_v60 = vpop.f32.mrf.mxu1  ;;  %v509_v27 = vpop.f32.mrf.mxu0 }
 0x146   :  { %v434_v61 = vadd.f32 %v429_v60, %v343_v58 }
 0x147   :  { %v431_v62 = vpop.f32.mrf.mxu1  ;;  %v511_v63 = vpop.f32.mrf.mxu0 }
 0x148   :  { %v435_v0 = vadd.f32 %v431_v62, %v344_v59  ;;  %v514_v1 = vadd.f32 %v509_v27, %v434_v61 }
 0x149   :  { %v600_v5 = vpop.f32.mrf.mxu1 }
 0x14a   :  { %v515_v6 = vadd.f32 %v511_v63, %v435_v0  ;;  %v605_v7 = vadd.f32 %v600_v5, %v514_v1 }
 0x14b   :  { %v602_v9 = vpop.f32.mrf.mxu1 }
 0x14c   :  { %v606_v10 = vadd.f32 %v602_v9, %v515_v6 }
 0x14d   :  { %v691_v11 = vpop.f32.mrf.mxu0 }
 0x14e   :  { %v696_v12 = vadd.f32 %v691_v11, %v605_v7 }
 0x14f   :  { %v693_v13 = vpop.f32.mrf.mxu0 }
 0x150   :  { %v697_v16 = vadd.f32 %v693_v13, %v606_v10  ;;  %v780_v17 = vpop.f32.mrf.mxu1 }
 0x151   :  { %v785_v18 = vadd.f32 %v780_v17, %v696_v12 }
 0x152   :  { %v782_v19 = vpop.f32.mrf.mxu1 }
 0x153   :  { %v786_v20 = vadd.f32 %v782_v19, %v697_v16 }
 0x155   :  { %v871_v21 = vpop.f32.mrf.mxu0 }
 0x156   :  { %v876_v22 = vadd.f32 %v871_v21, %v785_v18 }
 0x157   :  { %v873_v24 = vpop.f32.mrf.mxu0 }
 0x158   :  { %v877_v28 = vadd.f32 %v873_v24, %v786_v20  ;;  %v883_v29 = vadd.f32 %v881_v23, %v876_v22  ;;  %v984_v30 = vpop.f32.mrf.mxu1 }
 0x15a   :  { %v884_v31 = vadd.f32 %v881_v23, %v877_v28  ;;  %vm885_vm14 = vcmp.gt.f32.partialorder %v883_v29, 0.0  ;;  %v887_v32 = vmul.f32 0.01, %v883_v29  ;;  %v986_v35 = vpop.f32.mrf.mxu1 }
 0x15c   :  { %vm886_vm15 = vcmp.gt.f32.partialorder %v884_v31, 0.0  ;;  %v888_v25 = vmul.f32 0.01, %v884_v31  ;;  %v889_v33 = vsel %vm885_vm14, %v883_v29, %v887_v32 }
 0x15d   :  { %891 = vst [vmem:[#allocation2] sm:$0xff] %v889_v33  ;;  %v1061_v36 = vpop.f32.mrf.mxu0 }
 0x15e   :  { %v890_v37 = vsel %vm886_vm15, %v884_v31, %v888_v25  ;;  %v1062_v4 = vadd.f32 %v1061_v36, %v984_v30 }
 0x15f   :  { %892 = vst [vmem:[#allocation2 + $0x8] sm:$0xff] %v890_v37  ;;  %v1063_v34 = vpop.f32.mrf.mxu0 }
 0x160   :  { %v1064_v3 = vadd.f32 %v1063_v34, %v986_v35 }
 0x161   :  { %v1146_v38 = vpop.f32.mrf.mxu1 }
 0x162   :  { %v1151_v39 = vadd.f32 %v1146_v38, %v1062_v4 }
 0x163   :  { %v1148_v40 = vpop.f32.mrf.mxu1 }
 0x164   :  { %v1152_v41 = vadd.f32 %v1148_v40, %v1064_v3 }
 0x165   :  { %v1233_v42 = vpop.f32.mrf.mxu0  ;;  %v1310_v43 = vpop.f32.mrf.mxu1 }
 0x166   :  { %v1238_v44 = vadd.f32 %v1233_v42, %v1151_v39 }
 0x167   :  { %v1235_v45 = vpop.f32.mrf.mxu0  ;;  %v1312_v46 = vpop.f32.mrf.mxu1 }
 0x168   :  { %v1239_v47 = vadd.f32 %v1235_v45, %v1152_v41  ;;  %v1315_v48 = vadd.f32 %v1310_v43, %v1238_v44 }
 0x169   :  { %v1397_v14 = vpop.f32.mrf.mxu0 }
 0x16a   :  { %v1316_v15 = vadd.f32 %v1312_v46, %v1239_v47  ;;  %v1402_v50 = vadd.f32 %v1397_v14, %v1315_v48 }
 0x16b   :  { %v1399_v49 = vpop.f32.mrf.mxu0 }
 0x16c   :  { %v1403_v52 = vadd.f32 %v1399_v49, %v1316_v15 }
 0x16d   :  { %v1484_v51 = vpop.f32.mrf.mxu1 }
 0x16e   :  { %v1489_v53 = vadd.f32 %v1484_v51, %v1402_v50 }
 0x16f   :  { %v1486_v2 = vpop.f32.mrf.mxu1 }
 0x170   :  { %v1569_v54 = vpop.f32.mrf.mxu0  ;;  %v1490_v55 = vadd.f32 %v1486_v2, %v1403_v52 }
 0x171   :  { %v1574_v8 = vadd.f32 %v1569_v54, %v1489_v53 }
 0x172   :  { %v1571_v56 = vpop.f32.mrf.mxu0 }
 0x173   :  { %v1575_v58 = vadd.f32 %v1571_v56, %v1490_v55 }
 0x175   :  { %v1656_v57 = vpop.f32.mrf.mxu1 }
 0x176   :  { %v1661_v26 = vadd.f32 %v1656_v57, %v1574_v8 }
 0x177   :  { %v1658_v59 = vpop.f32.mrf.mxu1 }
 0x178   :  { %v1663_v60 = vadd.f32 %v1661_v26, %v881_v23  ;;  %v1662_v27 = vadd.f32 %v1658_v59, %v1575_v58 }
 0x17a   :  { %vm1665_vm0 = vcmp.gt.f32.partialorder %v1663_v60, 0.0  ;;  %v1667_v61 = vmul.f32 0.01, %v1663_v60  ;;  %v1664_v62 = vadd.f32 %v1662_v27, %v881_v23 }
 0x17c   :  { %v1669_v63 = vsel %vm1665_vm0, %v1663_v60, %v1667_v61  ;;  %vm1666_vm1 = vcmp.gt.f32.partialorder %v1664_v62, 0.0  ;;  %v1668_v0 = vmul.f32 0.01, %v1664_v62 }
 0x17d   :  { %1672 = vst [vmem:[#allocation2 + $0x10] sm:$0xff] %v1669_v63 }
 0x17e   :  { %v1670_v1 = vsel %vm1666_vm1, %v1664_v62, %v1668_v0 }
 0x17f   :  { %1673 = vst [vmem:[#allocation2 + $0x18] sm:$0xff] %v1670_v1 }
 0x180   :  { %1779 = shalt.err (!%p1776_p4)
}
 0x181   :  { %s1801_s18 = smov 256  }
 0x182   :  { %1685 = dma.vmem_to_hbm [thread:$0]  %s1680_s16, 512, %s2169_s3, [#allocation3], %s1801_s18, %s1801_s18, %s1791_s15  }
 0x183   :  { %1788 = dma.done.wait [#allocation3], 512  }
 0x184   :  { %1789 = vsyncadd [#allocation3], 4294966784 }
 0x185   :  { %1689 = vsyncpa [#allocation3], 1 }

</bundles_post_ra>
